<compile_context>
chip_gen: v7x
topology: tpu7x:2x2x1
jax: 0.10.0
libtpu: 0.0.40
codegen_flags: <defaults>
</compile_context>

<pallas_src>
import numpy as np
import jax
import jax.numpy as jnp
from jax.experimental import pallas as pl
from jax.experimental.pallas import tpu as pltpu


# ----------------------------- Pallas kernel -------------------------------

def _se_scale_kernel(fs_ref, wct_ref, w2_ref, fb_ref, o_ref):
    # fs_ref : (1, 1, K)         flattened feat_small row for this batch index
    # wct_ref: (C_out, K)        pool + 4x4 conv folded, lane-dense along K
    # w2_ref : (C_out, C_out)    1x1 conv weight
    # fb_ref : (1, C_out, col)   lane-dense tile of flattened feat_big
    fs = fs_ref[0]                                               # (1, K)
    # y1[o] = sum_k WcT[o, k] * fs[k]   (pool + 4x4 conv folded into one matvec)
    y1 = jax.lax.dot_general(
        wct_ref[...], fs, (((1,), (1,)), ((), ())),
        preferred_element_type=jnp.float32)                      # (C_out, 1)
    y1 = y1 * jax.nn.sigmoid(y1)                                 # Swish
    y2 = jnp.dot(w2_ref[...], y1,
                 preferred_element_type=jnp.float32)             # (C_out, 1)
    gate = jax.nn.sigmoid(y2)                                    # (C_out, 1)
    g = gate[None].astype(fb_ref.dtype)                          # (1, C_out, 1)
    # Broadcast multiply along lanes; unmasked lane-dense store.
    o_ref[...] = (fb_ref[...] * g).astype(o_ref.dtype)


# --------------------------- weight preprocessing ---------------------------

def _adaptive_pool_matrix(in_size, out_size=4):
    """Column-stochastic matrix reproducing torch AdaptiveAvgPool bin rule."""
    P = np.zeros((in_size, out_size), np.float32)
    for i in range(out_size):
        s = (i * in_size) // out_size
        e = -((-(i + 1) * in_size) // out_size)  # ceil((i+1)*in/out)
        P[s:e, i] = 1.0 / (e - s)
    return P


def _spectral_normalize(w, key, n_iter=10):
    # TODO(synk): torch.nn.utils.spectral_norm does ONE power iteration per
    # forward with a persistent u buffer; here it is approximated once at
    # preprocessing time with a fixed number of iterations.
    mat = w.reshape(w.shape[0], -1)
    u = jax.random.normal(key, (w.shape[0],), dtype=w.dtype)
    u = u / (jnp.linalg.norm(u) + 1e-12)
    v = None
    for _ in range(n_iter):
        v = mat.T @ u
        v = v / (jnp.linalg.norm(v) + 1e-12)
        u = mat @ v
        u = u / (jnp.linalg.norm(u) + 1e-12)
    sigma = u @ (mat @ v)
    return w / sigma


def fold_se_weights(w1, w2, H, W):
    """Fold AdaptiveAvgPool2d(4) + Conv2d(4x4, no bias) into one dense weight.

    Returns WcT (C_out, C_in*H*W) — lane-dense along K — and W2 (C_out, C_out).
    Call once per weight update; do NOT recompute every forward.
    """
    C_out, C_in, kh, kw = w1.shape
    Ph = jnp.asarray(_adaptive_pool_matrix(H, kh))   # (H, 4)
    Pw = jnp.asarray(_adaptive_pool_matrix(W, kw))   # (W, 4)
    # WcT[o, (c,h,w)] = sum_{i,j} Ph[h,i] Pw[w,j] w1[o,c,i,j]
    wct = jnp.einsum('hi,wj,ocij->ochw', Ph, Pw, w1.astype(jnp.float32))
    wct = wct.reshape(C_out, C_in * H * W)
    w2m = w2.reshape(C_out, C_out).astype(jnp.float32)
    return wct, w2m


# ------------------------------ tiling helpers ------------------------------

def _vmem_budget_bytes():
    """Per-buffer tile budget, gated on chip generation."""
    try:
        cap = getattr(pltpu.get_tpu_info(), "vmem_capacity_bytes", None)
    except Exception:
        cap = None
    if cap is not None and cap > (64 << 20):
        return 16 << 20      # v5e / v6e: 128 MiB physical VMEM
    return 4 << 20           # v7x-class (64 MiB) or unknown: stay conservative


def _pick_col_tile(n, c_out, cols_padded, itemsize, budget):
    """Largest multiple-of-128 column tile within budget; keep >=2 grid steps."""
    max_cols = max(128, ((budget // max(1, c_out * itemsize)) // 128) * 128)
    if cols_padded <= max_cols:
        col_tile = cols_padded
    else:
        col_tile = 128
        for d in range(128, max_cols + 1, 128):
            if cols_padded % d == 0:
                col_tile = d
    # Keep >= 2 parallel grid steps for megacore when it is free.
    if n * (cols_padded // col_tile) < 2 and col_tile % 256 == 0:
        col_tile //= 2
    return col_tile


# ------------------------------ SEBlock forward -----------------------------

def se_block_forward(feat_small, feat_big, wct, w2m, *, donate_feat_big=False):
    N, C_in, H, W = feat_small.shape
    Nb, C_out, Hb, Wb = feat_big.shape
    assert N == Nb
    K = C_in * H * W
    assert wct.shape == (C_out, K)
    assert w2m.shape == (C_out, C_out)

    fs3 = feat_small.reshape(N, 1, K).astype(jnp.float32)

    # Lane-dense view of feat_big; pad last dim up to a multiple of 128 so
    # every output store is an unmasked vst.
    cols = Hb * Wb
    cols_p = ((cols + 127) // 128) * 128
    fb3 = feat_big.reshape(N, C_out, cols)
    if cols_p != cols:
        fb3 = jnp.pad(fb3, ((0, 0), (0, 0), (0, cols_p - cols)))

    itemsize = jnp.dtype(feat_big.dtype).itemsize
    budget = _vmem_budget_bytes()
    col_tile = _pick_col_tile(N, C_out, cols_p, itemsize, budget)
    grid = (N, cols_p // col_tile)

    fb_tile_bytes = C_out * col_tile * itemsize
    # Double-buffered fb-in + out tiles plus small weight/activation buffers.
    vmem_limit = int(min(100 << 20, max(32 << 20, 4 * fb_tile_bytes + (8 << 20))))

    out3 = pl.pallas_call(
        _se_scale_kernel,
        grid=grid,
        in_specs=[
            pl.BlockSpec((1, 1, K), lambda n, j: (n, 0, 0)),          # feat_small row
            pl.BlockSpec((C_out, K), lambda n, j: (0, 0)),            # folded WcT
            pl.BlockSpec((C_out, C_out), lambda n, j: (0, 0)),        # 1x1 conv W2
            pl.BlockSpec((1, C_out, col_tile), lambda n, j: (n, 0, j)),  # feat_big tile
        ],
        out_specs=pl.BlockSpec((1, C_out, col_tile), lambda n, j: (n, 0, j)),
        out_shape=jax.ShapeDtypeStruct((N, C_out, cols_p), feat_big.dtype),
        compiler_params=pltpu.CompilerParams(
            dimension_semantics=("parallel", "parallel"),
            vmem_limit_bytes=vmem_limit),
        input_output_aliases=({3: 0} if donate_feat_big else {}),
    )(fs3, wct, w2m, fb3)

    if cols_p != cols:
        out3 = out3[..., :cols]
    return out3.reshape(N, C_out, Hb, Wb)


# ----------------------------------- main -----------------------------------

if __name__ == "__main__":
    key = jax.random.PRNGKey(0)
    k1, k2, k3, k4, k5, k6 = jax.random.split(key, 6)

    N, C_in, C_out = 2, 8, 4
    H = W = 16
    Hb = Wb = 32

    feat_small = jax.random.normal(k1, (N, C_in, H, W), jnp.float32)
    feat_big = jax.random.normal(k2, (N, C_out, Hb, Wb), jnp.float32)

    # Deterministic synthetic conv weights: Conv2d(C_in, C_out, 4), Conv2d(C_out, C_out, 1)
    w1 = jax.random.normal(k3, (C_out, C_in, 4, 4), jnp.float32) * 0.1
    w2 = jax.random.normal(k4, (C_out, C_out, 1, 1), jnp.float32) * 0.1
    w1 = _spectral_normalize(w1, k5)
    w2 = _spectral_normalize(w2, k6)

    # Weight preprocessing hoisted out of the forward path (once per update).
    wct, w2m = fold_se_weights(w1, w2, H, W)

    fwd = jax.jit(se_block_forward)
    out = jax.block_until_ready(fwd(feat_small, feat_big, wct, w2m))

    # Pure-JAX reference of the same forward pass.
    Phj = jnp.asarray(_adaptive_pool_matrix(H, 4))
    Pwj = jnp.asarray(_adaptive_pool_matrix(W, 4))
    pooled_ref = jnp.einsum('nchw,hi,wj->ncij', feat_small, Phj, Pwj)
    y1 = jnp.einsum('ncij,ocij->no', pooled_ref, w1)
    y1 = y1 * jax.nn.sigmoid(y1)
    y2 = y1 @ w2.reshape(C_out, C_out).T
    gate_ref = jax.nn.sigmoid(y2)
    ref = feat_big * gate_ref[:, :, None, None]

    assert out.shape == ref.shape and out.dtype == ref.dtype
    np.testing.assert_allclose(np.asarray(out), np.asarray(ref), rtol=1e-5, atol=1e-5)
    print("KERNEL_OK")
</pallas_src>

<mosaic_0001>
module attributes {stable_mosaic.version = 11 : i64} {
  func.func @_se_scale_kernel(%arg0: i32, %arg1: i32, %arg2: memref<1x1x2048xf32, #tpu.memory_space<vmem>>, %arg3: memref<4x2048xf32, #tpu.memory_space<vmem>>, %arg4: memref<4x4xf32, #tpu.memory_space<vmem>>, %arg5: memref<1x4x1024xf32, #tpu.memory_space<vmem>>, %arg6: memref<1x4x1024xf32, #tpu.memory_space<vmem>>) attributes {dimension_semantics = [#tpu.dimension_semantics<parallel>, #tpu.dimension_semantics<parallel>], iteration_bounds = array<i64: 2, 1>, scalar_prefetch = 0 : i64, scratch_operands = 0 : i64, tpu.core_type = #tpu.core_type<tc>, window_params = [{transform_indices = @transform_0, window_bounds = array<i64: 1, 1, 2048>}, {pipeline_mode = #tpu.pipeline_mode<synchronous>, transform_indices = @transform_1, window_bounds = array<i64: 4, 2048>}, {pipeline_mode = #tpu.pipeline_mode<synchronous>, transform_indices = @transform_2, window_bounds = array<i64: 4, 4>}, {transform_indices = @transform_3, window_bounds = array<i64: 1, 4, 1024>}, {transform_indices = @transform_4, window_bounds = array<i64: 1, 4, 1024>}]} {
    %c0 = arith.constant 0 : index
    %c0_0 = arith.constant 0 : index
    %c0_1 = arith.constant 0 : index
    %0 = vector.load %arg2[%c0, %c0_0, %c0_1] : memref<1x1x2048xf32, #tpu.memory_space<vmem>>, vector<1x1x2048xf32>
    %1 = vector.shape_cast %0 : vector<1x1x2048xf32> to vector<1x2048xf32>
    %c0_2 = arith.constant 0 : index
    %c0_3 = arith.constant 0 : index
    %2 = vector.load %arg3[%c0_2, %c0_3] : memref<4x2048xf32, #tpu.memory_space<vmem>>, vector<4x2048xf32>
    %cst = arith.constant dense<0.000000e+00> : vector<4x1xf32>
    %3 = tpu.matmul %2, %1, %cst {dimension_numbers = #tpu.dot_dimension_numbers<[1], [1], [0], [0], [0, 0, 1, 0], [], []>} : vector<4x2048xf32>, vector<1x2048xf32>, vector<4x1xf32> -> vector<4x1xf32>
    %4 = arith.negf %3 : vector<4x1xf32>
    %5 = math.exp %4 : vector<4x1xf32>
    %cst_4 = arith.constant 1.000000e+00 : f32
    %6 = vector.broadcast %cst_4 : f32 to vector<4x1xf32>
    %7 = arith.addf %6, %5 : vector<4x1xf32>
    %8 = arith.divf %6, %7 : vector<4x1xf32>
    %9 = arith.mulf %3, %8 : vector<4x1xf32>
    %c0_5 = arith.constant 0 : index
    %c0_6 = arith.constant 0 : index
    %10 = vector.load %arg4[%c0_5, %c0_6] : memref<4x4xf32, #tpu.memory_space<vmem>>, vector<4x4xf32>
    %cst_7 = arith.constant dense<0.000000e+00> : vector<4x1xf32>
    %11 = tpu.matmul %10, %9, %cst_7 {dimension_numbers = #tpu.dot_dimension_numbers<[1], [0], [0], [1], [0, 0, 1, 1], [], []>} : vector<4x4xf32>, vector<4x1xf32>, vector<4x1xf32> -> vector<4x1xf32>
    %12 = arith.negf %11 : vector<4x1xf32>
    %13 = math.exp %12 : vector<4x1xf32>
    %cst_8 = arith.constant 1.000000e+00 : f32
    %14 = vector.broadcast %cst_8 : f32 to vector<4x1xf32>
    %15 = arith.addf %14, %13 : vector<4x1xf32>
    %16 = arith.divf %14, %15 : vector<4x1xf32>
    %17 = vector.shape_cast %16 : vector<4x1xf32> to vector<1x4x1xf32>
    %c0_9 = arith.constant 0 : index
    %c0_10 = arith.constant 0 : index
    %c0_11 = arith.constant 0 : index
    %18 = vector.load %arg5[%c0_9, %c0_10, %c0_11] : memref<1x4x1024xf32, #tpu.memory_space<vmem>>, vector<1x4x1024xf32>
    %19 = vector.broadcast %17 : vector<1x4x1xf32> to vector<1x4x1024xf32>
    %20 = arith.mulf %18, %19 : vector<1x4x1024xf32>
    %c0_12 = arith.constant 0 : index
    %c0_13 = arith.constant 0 : index
    %c0_14 = arith.constant 0 : index
    %21 = vector.load %arg6[%c0_12, %c0_13, %c0_14] : memref<1x4x1024xf32, #tpu.memory_space<vmem>>, vector<1x4x1024xf32>
    tpu.vector_store %arg6[%c0_12, %c0_13, %c0_14], %20 {strides = array<i32>} : memref<1x4x1024xf32, #tpu.memory_space<vmem>>, vector<1x4x1024xf32>,
    return
  }
  func.func @transform_0(%arg0: i32, %arg1: i32) -> (i32, i32, i32) {
    %c0_i32 = arith.constant 0 : i32
    %c0_i32_0 = arith.constant 0 : i32
    %c0_i32_1 = arith.constant 0 : i32
    return %arg0, %c0_i32, %c0_i32_0 : i32, i32, i32
  }
  func.func @transform_1(%arg0: i32, %arg1: i32) -> (i32, i32) {
    %c0_i32 = arith.constant 0 : i32
    %c0_i32_0 = arith.constant 0 : i32
    %c0_i32_1 = arith.constant 0 : i32
    return %c0_i32, %c0_i32_0 : i32, i32
  }
  func.func @transform_2(%arg0: i32, %arg1: i32) -> (i32, i32) {
    %c0_i32 = arith.constant 0 : i32
    %c0_i32_0 = arith.constant 0 : i32
    %c0_i32_1 = arith.constant 0 : i32
    return %c0_i32, %c0_i32_0 : i32, i32
  }
  func.func @transform_3(%arg0: i32, %arg1: i32) -> (i32, i32, i32) {
    %c0_i32 = arith.constant 0 : i32
    %c0_i32_0 = arith.constant 0 : i32
    return %arg0, %c0_i32, %arg1 : i32, i32, i32
  }
  func.func @transform_4(%arg0: i32, %arg1: i32) -> (i32, i32, i32) {
    %c0_i32 = arith.constant 0 : i32
    %c0_i32_0 = arith.constant 0 : i32
    return %arg0, %c0_i32, %arg1 : i32, i32, i32
  }
}

</mosaic_0001>

<bundles_post_ra>
// kernel: se_block_forward.1
= control target key start
LH: loop header
LB: loop body
LE: loop exit
PB: predicated region body
PF: predicated region fallthrough
CT: control target
= control target key end

     0   :  { %s741_s15 = smov 0   ;;  %s743_s16 = smov 0   ;;  %s836_s0 = inlined_call_operand.vmem [shape: f32[2,1,2048], index: 0, kind: input, shape index: {}]   ;;  %s837_s1 = inlined_call_operand.vmem [shape: f32[4,2048], index: 1, kind: input, shape index: {}]   ;;  %s838_s2 = inlined_call_operand.vmem [shape: f32[4,4], index: 2, kind: input, shape index: {}]   ;;  %s839_s3 = inlined_call_operand.vmem [shape: f32[2,4,1024], index: 3, kind: input, shape index: {}]   ;;  %s840_s4 = inlined_call_operand.vmem [shape: f32[2,4,1024], index: 4, kind: output, shape index: {}]  }
   0x1   :  { %s745_s17 = smov 0  }
   0x2 LB: > { %s26_s18 = sadd.s32 1, %s706_s16  ;;  %p630_p0 = scmp.ge.s32.totalorder %s710_s17, 1  ;;  %s710_s17 = sphi %s745_s17, %s14_s17   ;;  %s706_s16 = sphi %s743_s16, %s842_s16   ;;  %s702_s15 = sphi %s741_s15, %s841_s15  }
   0x3   : > { %p28_p1 = scmp.ge.s32.totalorder %s26_s18, 2  ;;  %p192_p2 = scmp.lt.s32.totalorder %s710_s17, 3 }
   0x5   : > { %s844_s18 = smov (%p28_p1, %s26_s18), 0  ;;  %p193_p3 = pnand %p630_p0, %p192_p2 }
   0x6   : > { %p230_p4 = scmp.lt.s32.totalorder (!%p193_p3), %s702_s15, 1  ;;  %v266_v0 = vlaneseq (!%p193_p3)  ;;  %v256_v17 = vld [vmem:[%s837_s1] sm:$0xff] (!%p193_p3)  ;;  %v257_v18 = vld [vmem:[%s837_s1 + $0x8] sm:$0xff] (!%p193_p3)  ;;  %v258_v25 = vld [vmem:[%s837_s1 + $0x10] sm:$0xff] (!%p193_p3)  ;;  %vm378_vm0 = vcmask (!%p193_p3), 1043456   ;;  %vm713_vm1 = vmmov (!%p193_p3), 0  }
   0x7   : > { %196 = sbr.rel (%p193_p3) target bundleno = 600 (0x258), region = 36  ;;  %v259_v34 = vld [vmem:[%s837_s1 + $0x18] sm:$0xff] (!%p193_p3)  ;;  %v260_v45 = vld [vmem:[%s837_s1 + $0x20] sm:$0xff] (!%p193_p3)  ;;  %v261_v55 = vld [vmem:[%s837_s1 + $0x28] sm:$0xff] (!%p193_p3)  ;;  %vm420_vm2 = vcmask (!%p193_p3), 31744  }
   0x8   : > { %v761_v1 = vshrl.u32 (!%p193_p3), %v266_v0, 7 }
   0xa   : > { %v268_v2 = vsub.s32 (!%p193_p3), 0, %v761_v1  ;;  %v272_v3 = vsub.s32 (!%p193_p3), 1, %v761_v1  ;;  %v276_v4 = vsub.s32 (!%p193_p3), 2, %v761_v1  ;;  %v280_v5 = vsub.s32 (!%p193_p3), 3, %v761_v1 }
   0xb   : > { %v284_v6 = vsub.s32 (!%p193_p3), 4, %v761_v1  ;;  %v288_v7 = vsub.s32 (!%p193_p3), 5, %v761_v1  ;;  %v292_v9 = vsub.s32 (!%p193_p3), 6, %v761_v1  ;;  %v296_v10 = vsub.s32 (!%p193_p3), 7, %v761_v1 }
   0xe   : > { %s846_s15 = smov (!%p230_p4, %s702_s15), 1 }
   0xf   : > { %s631_s19 = sshll.u32 %s846_s15, 4 }
  0x10   : > { %s233_s22 = scalar_lea.vmem %s836_s0, %s631_s19  ;;  %s642_s19 = sshll.u32 %s846_s15, 5 }
  0x11   : > { %v254_v8 = vld [vmem:[%s233_s22] sm:$0xff]  ;;  %v255_v20 = vld [vmem:[%s233_s22 + $0x8] sm:$0xff]  ;;  %s242_s22 = scalar_lea.vmem %s839_s3, %s642_s19  ;;  %s252_s25 = scalar_lea.vmem %s840_s4, %s642_s19 }
  0x12   : > { %v269_v11 = vrot.slane %v254_v8, %v268_v2  ;;  %v273_v12 = vrot.slane %v254_v8, %v272_v3  ;;  %v277_v13 = vrot.slane %v254_v8, %v276_v4  ;;  %v281_v14 = vrot.slane %v254_v8, %v280_v5 }
  0x13   : > { %v285_v15 = vrot.slane %v254_v8, %v284_v6  ;;  %v289_v16 = vrot.slane %v254_v8, %v288_v7  ;;  %v293_v19 = vrot.slane %v254_v8, %v292_v9  ;;  %v297_v21 = vrot.slane %v254_v8, %v296_v10 }
  0x14   : > { %v330_v22 = vcombine.low %v269_v11, %v273_v12  ;;  %v331_v23 = vcombine.low %v277_v13, %v281_v14  ;;  %v301_v28 = vrot.slane %v255_v20, %v268_v2  ;;  %v305_v29 = vrot.slane %v255_v20, %v272_v3  ;;  %v262_v2 = vld [vmem:[%s837_s1 + $0x30] sm:$0xff] }
  0x15   : > { %v332_v24 = vcombine.low %v285_v15, %v289_v16  ;;  %v333_v30 = vcombine.low %v293_v19, %v297_v21  ;;  %v309_v38 = vrot.slane %v255_v20, %v276_v4  ;;  %v313_v39 = vrot.slane %v255_v20, %v280_v5 }
  0x16   : > { %v346_v26 = vmul.f32 %v330_v22, %v256_v17  ;;  %v347_v27 = vmul.f32 %v331_v23, %v257_v18  ;;  %v334_v41 = vcombine.low %v301_v28, %v305_v29  ;;  %v317_v48 = vrot.slane %v255_v20, %v284_v6 }
  0x17   : > { %v348_v31 = vmul.f32 %v332_v24, %v258_v25  ;;  %v349_v42 = vmul.f32 %v333_v30, %v259_v34  ;;  %v321_v49 = vrot.slane %v255_v20, %v288_v7  ;;  %v335_v51 = vcombine.low %v309_v38, %v313_v39 }
  0x18   : > { %v362_v32 = vcombine.high %v346_v26, %v346_v26  ;;  %v363_v33 = vcombine.high %v347_v27, %v347_v27  ;;  %v379_v35 = vsel %vm378_vm0, %v346_v26, 0.0  ;;  %v382_v37 = vsel %vm378_vm0, %v347_v27, 0.0 }
  0x19   : > { %v364_v43 = vcombine.high %v348_v31, %v348_v31  ;;  %v386_v47 = vsel %vm378_vm0, %v348_v31, 0.0  ;;  %v350_v52 = vmul.f32 %v334_v41, %v260_v45  ;;  %v365_v53 = vcombine.high %v349_v42, %v349_v42 }
  0x1a   : > { %v380_v36 = vsel %vm378_vm0, %v362_v32, 0.0  ;;  %v384_v44 = vsel %vm378_vm0, %v363_v33, 0.0  ;;  %v390_v57 = vsel %vm378_vm0, %v349_v42, 0.0  ;;  %v325_v58 = vrot.slane %v255_v20, %v292_v9 }
  0x1b   : > { %v381_v40 = vadd.f32 %v380_v36, %v379_v35  ;;  %v388_v54 = vsel %vm378_vm0, %v364_v43, 0.0  ;;  %v329_v59 = vrot.slane %v255_v20, %v296_v10  ;;  %v336_v61 = vcombine.low %v317_v48, %v321_v49  ;;  %v263_v10 = vld [vmem:[%s837_s1 + $0x38] sm:$0xff]  ;;  %v419_v35 = vld [vmem:[%s838_s2] sm:$0xf]  ;;  %v504_v48 = vld [vmem:[%s242_s22 + $0x8] sm:$0xff] }
  0x1c   : > { %v351_v62 = vmul.f32 %v335_v51, %v261_v55  ;;  %v366_v63 = vcombine.high %v350_v52, %v350_v52  ;;  %v392_v0 = vsel %vm378_vm0, %v365_v53, 0.0  ;;  %v394_v4 = vsel %vm378_vm0, %v350_v52, 0.0  ;;  %v505_v49 = vld [vmem:[%s242_s22 + $0x10] sm:$0xff] }
  0x1d   : > { %v383_v46 = vadd.f32 %v382_v37, %v381_v40  ;;  %v337_v6 = vcombine.low %v325_v58, %v329_v59  ;;  %v352_v7 = vmul.f32 %v336_v61, %v262_v2  ;;  %v712_v28 = vmov 0.0  }
  0x1e   : > { %v367_v8 = vcombine.high %v351_v62, %v351_v62  ;;  %v396_v9 = vsel %vm378_vm0, %v366_v63, 0.0  ;;  %v398_v12 = vsel %vm378_vm0, %v351_v62, 0.0  ;;  %646 = vmatprep.subr.mxu0 %v712_v28  ;;  %648 = vmatprep.mubr.msk.f32.mxu0 %vm713_vm1, %v712_v28  ;;  %v714_v36 = vmov 0  }
  0x1f   : > { %v385_v50 = vadd.f32 %v384_v44, %v383_v46  ;;  %v353_v14 = vmul.f32 %v337_v6, %v263_v10  ;;  %v368_v15 = vcombine.high %v352_v7, %v352_v7  ;;  %v402_v18 = vsel %vm378_vm0, %v352_v7, 0.0  ;;  %679 = vset.pattern.permute.xlu0 %v714_v36 }
  0x20   : > { %v400_v16 = vsel %vm378_vm0, %v367_v8, 0.0  ;;  %v715_v43 = vmov 839922192  }
  0x21   : > { %v387_v56 = vadd.f32 %v386_v47, %v385_v50  ;;  %v369_v20 = vcombine.high %v353_v14, %v353_v14  ;;  %v404_v21 = vsel %vm378_vm0, %v368_v15, 0.0  ;;  %v406_v23 = vsel %vm378_vm0, %v353_v14, 0.0  ;;  %v503_v47 = vld [vmem:[%s242_s22] sm:$0xff]  ;;  %v506_v50 = vld [vmem:[%s242_s22 + $0x18] sm:$0xff] }
  0x22   : > { %v512_v44 = vunpack.c.l.s4 %v715_v43 }
  0x23   : > { %v389_v60 = vadd.f32 %v388_v54, %v387_v56  ;;  %v408_v25 = vsel %vm378_vm0, %v369_v20, 0.0 }
  0x24   : > { %v513_v45 = vunpack.c.0.s8 %v512_v44 }
  0x25   : > { %v391_v3 = vadd.f32 %v390_v57, %v389_v60 }
  0x26   : > { %v516_v46 = vsub.s32 %v513_v45, %v761_v1 }
  0x27   : > { %v393_v5 = vadd.f32 %v392_v0, %v391_v3 }
  0x29   : > { %v395_v11 = vadd.f32 %v394_v4, %v393_v5 }
  0x2b   : > { %v397_v13 = vadd.f32 %v396_v9, %v395_v11 }
  0x2d   : > { %v399_v17 = vadd.f32 %v398_v12, %v397_v13 }
  0x2f   : > { %v401_v19 = vadd.f32 %v400_v16, %v399_v17 }
  0x31   : > { %v403_v22 = vadd.f32 %v402_v18, %v401_v19 }
  0x33   : > { %v405_v24 = vadd.f32 %v404_v21, %v403_v22 }
  0x35   : > { %v407_v26 = vadd.f32 %v406_v23, %v405_v24 }
  0x37   : > { %v409_v27 = vadd.f32 %v408_v25, %v407_v26 }
  0x39   : > { %410 = vadd.xlane.f32.xlu0 %v409_v27 }
  0xc6   : > { %v411_v29 = vpop.xlane.xlu0 %410 }
  0xc7   : > { %v636_v30 = vmul.f32 -1.442695, %v411_v29 }
  0xc9   : > { %680 = vpow2.f32 %v636_v30 }
  0xd3   : > { %v681_v31 = vpop.eup %680 }
  0xd4   : > { %v415_v32 = vadd.f32 1.0, %v681_v31 }
  0xd6   : > { %682 = vrcp.f32 %v415_v32 }
  0xe0   : > { %v683_v33 = vpop.eup %682 }
  0xe1   : > { %v418_v34 = vmul.f32 %v683_v33, %v411_v29 }
  0xe3   : > { %647 = vmatpush3.msk.msra.mxu0 %vm378_vm0, %v418_v34 }
  0xe4   : > { %649 = vmatmul.mubr.msk.f32.vlgmr.msra.gmra.mrb[0].mxu0 %vm420_vm2, %v419_v35 }
 0x1b7   : > { %v493_v37 = vpop.f32.mrb[0].mxu0 }
 0x1b8   : > { %v639_v38 = vmul.f32 -1.442695, %v493_v37  ;;  %v650_v39 = vpop.f32.mrb[1].mxu0 }
 0x1ba   : > { %684 = vpow2.f32 %v639_v38 }
 0x1c4   : > { %v685_v40 = vpop.eup %684 }
 0x1c5   : > { %v500_v41 = vadd.f32 1.0, %v685_v40 }
 0x1c7   : > { %686 = vrcp.f32 %v500_v41 }
 0x1d1   : > { %v687_v42 = vpop.eup %686 }
 0x1d2   : > { %509 = vperm.xlu0 %679, %v687_v42  }
 0x251   : > { %v510_v51 = vpop.permute.xlu0 %509 }
 0x252   : > { %v517_v52 = vrot.slane %v510_v51, %v516_v46 }
 0x254   : > { %v519_v53 = vmul.f32 %v517_v52, %v503_v47  ;;  %v520_v54 = vmul.f32 %v517_v52, %v504_v48  ;;  %v521_v55 = vmul.f32 %v517_v52, %v505_v49  ;;  %v522_v56 = vmul.f32 %v517_v52, %v506_v50 }
 0x256   : > { %523 = vst [vmem:[%s252_s25] sm:$0xff] %v519_v53  ;;  %524 = vst [vmem:[%s252_s25 + $0x8] sm:$0xff] %v520_v54 }
 0x257   : > { %525 = vst [vmem:[%s252_s25 + $0x10] sm:$0xff] %v521_v55  ;;  %526 = vst [vmem:[%s252_s25 + $0x18] sm:$0xff] %v522_v56 }
 0x258 PF: > { %s14_s17 = sadd.s32 1, %s710_s17   ;;  %s841_s15 = smov %s706_s16 }
 0x259   : > { %p11_p5 = scmp.ge.s32.totalorder %s14_s17, 4   ;;  %s842_s16 = smov %s844_s18 }
 0x25b   :  { %13 = sbr.rel (!%p11_p5) target bundleno = 2 (0x2), region = 69 }

</bundles_post_ra>
